<compile_context>
chip_gen: v7x
topology: tpu7x:2x2x1
jax: 0.10.0
libtpu: 0.0.40
codegen_flags: <defaults>
</compile_context>

<pallas_src>
import functools

import jax
import jax.numpy as jnp
from jax.experimental import pallas as pl
from jax.experimental.pallas import tpu as pltpu

_MXU_M = 256  # MXU M-granularity on v6e/v7x (v5e's 128 divides it too)


def _round_up(x, m):
    return ((x + m - 1) // m) * m


def _batch_tile(batch, block_b):
    """Pick the static batch tile size."""
    if batch <= 2 * _MXU_M:
        # Rollout / small-eval path: whole batch in one grid step.  A full-dim
        # block needs no padding and is always layout-legal.
        return batch
    # Training path: MXU-M-granularity tiles with >= 2 grid steps so both v7x
    # TensorCores get work under dimension_semantics=("parallel",).
    return min(block_b, _round_up(pl.cdiv(batch, 2), _MXU_M))


def _actor_kernel(ma_ref, s_ref, w1_ref, b1_ref, w2_ref, b2_ref, w3_ref, b3_ref,
                  o_ref):
    # Layer 1: (TB, S) @ (S, 256) + (1, 256), ReLU   (bf16 MXU inputs, f32 acc)
    a = jnp.dot(s_ref[...].astype(jnp.bfloat16), w1_ref[...],
                preferred_element_type=jnp.float32)
    a = jnp.maximum(a + b1_ref[...], 0.0)
    # Layer 2: (TB, 256) @ (256, 256) + (1, 256), ReLU
    a = jnp.dot(a.astype(jnp.bfloat16), w2_ref[...],
                preferred_element_type=jnp.float32)
    a = jnp.maximum(a + b2_ref[...], 0.0)
    # Layer 3: (TB, 256) @ (256, A) + (1, A), tanh, scale by max_action (f32 epilogue)
    a = jnp.dot(a.astype(jnp.bfloat16), w3_ref[...],
                preferred_element_type=jnp.float32)
    o_ref[...] = (ma_ref[0, 0] * jnp.tanh(a + b3_ref[...])).astype(o_ref.dtype)


@functools.partial(jax.jit, static_argnames=("block_b",))
def actor_forward(state, params, max_action, *, block_b=1024):
    """state: (B, state_dim) f32.  params: output of `prepare_actor_params`."""
    B, S = state.shape
    w1, b1 = params["w1"], params["b1"]
    w2, b2 = params["w2"], params["b2"]
    w3, b3 = params["w3"], params["b3"]
    A = w3.shape[1]

    tb = _batch_tile(B, block_b)
    grid = (pl.cdiv(B, tb),)  # last tile may be partial; Pallas handles the edge block

    # Runtime scalar in SMEM (no recompile when max_action changes).
    ma = jnp.full((1, 1), max_action, jnp.float32)

    const = lambda i: (0, 0)  # weights/biases resident in VMEM across the batch grid
    return pl.pallas_call(
        _actor_kernel,
        out_shape=jax.ShapeDtypeStruct((B, A), jnp.float32),
        grid=grid,
        in_specs=[
            pl.BlockSpec(memory_space=pltpu.MemorySpace.SMEM),   # max_action
            pl.BlockSpec((tb, S), lambda i: (i, 0)),             # state tile
            pl.BlockSpec(w1.shape, const),
            pl.BlockSpec(b1.shape, const),
            pl.BlockSpec(w2.shape, const),
            pl.BlockSpec(b2.shape, const),
            pl.BlockSpec(w3.shape, const),
            pl.BlockSpec(b3.shape, const),
        ],
        out_specs=pl.BlockSpec((tb, A), lambda i: (i, 0)),
        compiler_params=pltpu.CompilerParams(
            dimension_semantics=("parallel",)),
    )(ma, state, w1, b1, w2, b2, w3, b3)


def prepare_actor_params(raw_params):
    """One-time (per actor update) preprocessing: bf16 weights, (1, H) f32 biases.

    Keeping this out of `actor_forward` removes the per-call convert kernels and
    their HBM round trips from the latency-critical rollout path.
    """
    return {
        "w1": raw_params["w1"].astype(jnp.bfloat16),
        "b1": raw_params["b1"].reshape(1, -1).astype(jnp.float32),
        "w2": raw_params["w2"].astype(jnp.bfloat16),
        "b2": raw_params["b2"].reshape(1, -1).astype(jnp.float32),
        "w3": raw_params["w3"].astype(jnp.bfloat16),
        "b3": raw_params["b3"].reshape(1, -1).astype(jnp.float32),
    }


def init_params(key, state_dim, action_dim, hidden=256):
    """Deterministic synthetic f32 weights (shapes match the nn.Linear layers)."""
    k1, k2, k3, k4, k5, k6 = jax.random.split(key, 6)
    s1 = 1.0 / jnp.sqrt(state_dim)
    s2 = 1.0 / jnp.sqrt(hidden)
    return {
        # stored as (in, out); PyTorch nn.Linear stores (out, in)
        "w1": jax.random.uniform(k1, (state_dim, hidden), jnp.float32, -s1, s1),
        "b1": jax.random.uniform(k2, (1, hidden), jnp.float32, -s1, s1),
        "w2": jax.random.uniform(k3, (hidden, hidden), jnp.float32, -s2, s2),
        "b2": jax.random.uniform(k4, (1, hidden), jnp.float32, -s2, s2),
        "w3": jax.random.uniform(k5, (hidden, action_dim), jnp.float32, -s2, s2),
        "b3": jax.random.uniform(k6, (1, action_dim), jnp.float32, -s2, s2),
    }


def ref_forward(state, raw_params, max_action):
    """Pure-JAX reference with the kernel's numerics (bf16 matmul inputs, f32 acc)."""
    w1 = raw_params["w1"].astype(jnp.bfloat16)
    w2 = raw_params["w2"].astype(jnp.bfloat16)
    w3 = raw_params["w3"].astype(jnp.bfloat16)
    a = jnp.dot(state.astype(jnp.bfloat16), w1,
                preferred_element_type=jnp.float32) + raw_params["b1"]
    a = jnp.maximum(a, 0.0)
    a = jnp.dot(a.astype(jnp.bfloat16), w2,
                preferred_element_type=jnp.float32) + raw_params["b2"]
    a = jnp.maximum(a, 0.0)
    a = jnp.dot(a.astype(jnp.bfloat16), w3,
                preferred_element_type=jnp.float32) + raw_params["b3"]
    return max_action * jnp.tanh(a)


if __name__ == "__main__":
    key = jax.random.PRNGKey(0)
    k_state, k_params, k_big = jax.random.split(key, 3)

    state_dim, action_dim, max_action = 16, 8, 1.0
    raw = init_params(k_params, state_dim, action_dim)
    params = prepare_actor_params(raw)  # one-time, off the per-step hot path

    # Rollout-style tiny batch (single grid step, full-dim blocks).
    batch = 2
    state = jax.random.normal(k_state, (batch, state_dim), jnp.float32)
    out = jax.block_until_ready(actor_forward(state, params, max_action))
    ref = ref_forward(state, raw, max_action)
    assert out.shape == (batch, action_dim)
    assert jnp.allclose(out, ref, atol=2e-3, rtol=2e-3), (
        f"small-batch max abs err = {jnp.max(jnp.abs(out - ref))}")

    # Training-style batch (multi-step grid, partial last tile, megacore split).
    big_batch = 640
    big_state = jax.random.normal(k_big, (big_batch, state_dim), jnp.float32)
    big_out = jax.block_until_ready(actor_forward(big_state, params, max_action))
    big_ref = ref_forward(big_state, raw, max_action)
    assert big_out.shape == (big_batch, action_dim)
    assert jnp.allclose(big_out, big_ref, atol=2e-3, rtol=2e-3), (
        f"big-batch max abs err = {jnp.max(jnp.abs(big_out - big_ref))}")

    print("KERNEL_OK")
</pallas_src>

<mosaic_0001>
module attributes {stable_mosaic.version = 11 : i64} {
  func.func @_actor_kernel(%arg0: i32, %arg1: memref<1x1xf32, #tpu.memory_space<smem>>, %arg2: memref<2x16xf32, #tpu.memory_space<vmem>>, %arg3: memref<16x256xbf16, #tpu.memory_space<vmem>>, %arg4: memref<1x256xf32, #tpu.memory_space<vmem>>, %arg5: memref<256x256xbf16, #tpu.memory_space<vmem>>, %arg6: memref<1x256xf32, #tpu.memory_space<vmem>>, %arg7: memref<256x8xbf16, #tpu.memory_space<vmem>>, %arg8: memref<1x8xf32, #tpu.memory_space<vmem>>, %arg9: memref<2x8xf32, #tpu.memory_space<vmem>>) attributes {dimension_semantics = [#tpu.dimension_semantics<parallel>], iteration_bounds = array<i64: 1>, scalar_prefetch = 0 : i64, scratch_operands = 0 : i64, tpu.core_type = #tpu.core_type<tc>, window_params = [{transform_indices = @transform_0, window_bounds = array<i64: 1, 1>}, {transform_indices = @transform_1, window_bounds = array<i64: 2, 16>}, {pipeline_mode = #tpu.pipeline_mode<synchronous>, transform_indices = @transform_2, window_bounds = array<i64: 16, 256>}, {pipeline_mode = #tpu.pipeline_mode<synchronous>, transform_indices = @transform_3, window_bounds = array<i64: 1, 256>}, {pipeline_mode = #tpu.pipeline_mode<synchronous>, transform_indices = @transform_4, window_bounds = array<i64: 256, 256>}, {pipeline_mode = #tpu.pipeline_mode<synchronous>, transform_indices = @transform_5, window_bounds = array<i64: 1, 256>}, {pipeline_mode = #tpu.pipeline_mode<synchronous>, transform_indices = @transform_6, window_bounds = array<i64: 256, 8>}, {pipeline_mode = #tpu.pipeline_mode<synchronous>, transform_indices = @transform_7, window_bounds = array<i64: 1, 8>}, {transform_indices = @transform_8, window_bounds = array<i64: 2, 8>}]} {
    %c0 = arith.constant 0 : index
    %c0_0 = arith.constant 0 : index
    %0 = vector.load %arg2[%c0, %c0_0] : memref<2x16xf32, #tpu.memory_space<vmem>>, vector<2x16xf32>
    %1 = arith.truncf %0 : vector<2x16xf32> to vector<2x16xbf16>
    %c0_1 = arith.constant 0 : index
    %c0_2 = arith.constant 0 : index
    %2 = vector.load %arg3[%c0_1, %c0_2] : memref<16x256xbf16, #tpu.memory_space<vmem>>, vector<16x256xbf16>
    %cst = arith.constant dense<0.000000e+00> : vector<2x256xf32>
    %3 = tpu.matmul %1, %2, %cst {dimension_numbers = #tpu.dot_dimension_numbers<[1], [0], [0], [1], [0, 0, 1, 1], [], []>} : vector<2x16xbf16>, vector<16x256xbf16>, vector<2x256xf32> -> vector<2x256xf32>
    %c0_3 = arith.constant 0 : index
    %c0_4 = arith.constant 0 : index
    %4 = vector.load %arg4[%c0_3, %c0_4] : memref<1x256xf32, #tpu.memory_space<vmem>>, vector<1x256xf32>
    %5 = vector.broadcast %4 : vector<1x256xf32> to vector<2x256xf32>
    %6 = arith.addf %3, %5 : vector<2x256xf32>
    %cst_5 = arith.constant 0.000000e+00 : f32
    %7 = vector.broadcast %cst_5 : f32 to vector<2x256xf32>
    %8 = arith.maximumf %6, %7 : vector<2x256xf32>
    %9 = arith.truncf %8 : vector<2x256xf32> to vector<2x256xbf16>
    %c0_6 = arith.constant 0 : index
    %c0_7 = arith.constant 0 : index
    %10 = vector.load %arg5[%c0_6, %c0_7] : memref<256x256xbf16, #tpu.memory_space<vmem>>, vector<256x256xbf16>
    %cst_8 = arith.constant dense<0.000000e+00> : vector<2x256xf32>
    %11 = tpu.matmul %9, %10, %cst_8 {dimension_numbers = #tpu.dot_dimension_numbers<[1], [0], [0], [1], [0, 0, 1, 1], [], []>} : vector<2x256xbf16>, vector<256x256xbf16>, vector<2x256xf32> -> vector<2x256xf32>
    %c0_9 = arith.constant 0 : index
    %c0_10 = arith.constant 0 : index
    %12 = vector.load %arg6[%c0_9, %c0_10] : memref<1x256xf32, #tpu.memory_space<vmem>>, vector<1x256xf32>
    %13 = vector.broadcast %12 : vector<1x256xf32> to vector<2x256xf32>
    %14 = arith.addf %11, %13 : vector<2x256xf32>
    %cst_11 = arith.constant 0.000000e+00 : f32
    %15 = vector.broadcast %cst_11 : f32 to vector<2x256xf32>
    %16 = arith.maximumf %14, %15 : vector<2x256xf32>
    %17 = arith.truncf %16 : vector<2x256xf32> to vector<2x256xbf16>
    %c0_12 = arith.constant 0 : index
    %c0_13 = arith.constant 0 : index
    %18 = vector.load %arg7[%c0_12, %c0_13] : memref<256x8xbf16, #tpu.memory_space<vmem>>, vector<256x8xbf16>
    %cst_14 = arith.constant dense<0.000000e+00> : vector<2x8xf32>
    %19 = tpu.matmul %17, %18, %cst_14 {dimension_numbers = #tpu.dot_dimension_numbers<[1], [0], [0], [1], [0, 0, 1, 1], [], []>} : vector<2x256xbf16>, vector<256x8xbf16>, vector<2x8xf32> -> vector<2x8xf32>
    %c0_15 = arith.constant 0 : index
    %c0_16 = arith.constant 0 : index
    %20 = memref.load %arg1[%c0_15, %c0_16] : memref<1x1xf32, #tpu.memory_space<smem>>
    %c0_17 = arith.constant 0 : index
    %c0_18 = arith.constant 0 : index
    %21 = vector.load %arg8[%c0_17, %c0_18] : memref<1x8xf32, #tpu.memory_space<vmem>>, vector<1x8xf32>
    %22 = vector.broadcast %21 : vector<1x8xf32> to vector<2x8xf32>
    %23 = arith.addf %19, %22 : vector<2x8xf32>
    %24 = math.tanh %23 : vector<2x8xf32>
    %25 = vector.broadcast %20 : f32 to vector<2x8xf32>
    %26 = arith.mulf %25, %24 : vector<2x8xf32>
    %c0_19 = arith.constant 0 : index
    %c0_20 = arith.constant 0 : index
    %27 = vector.load %arg9[%c0_19, %c0_20] : memref<2x8xf32, #tpu.memory_space<vmem>>, vector<2x8xf32>
    tpu.vector_store %arg9[%c0_19, %c0_20], %26 {strides = array<i32>} : memref<2x8xf32, #tpu.memory_space<vmem>>, vector<2x8xf32>,
    return
  }
  func.func @transform_0(%arg0: i32) -> (i32, i32) {
    %c0_i32 = arith.constant 0 : i32
    %c0_i32_0 = arith.constant 0 : i32
    %c0_i32_1 = arith.constant 0 : i32
    return %c0_i32, %c0_i32_0 : i32, i32
  }
  func.func @transform_1(%arg0: i32) -> (i32, i32) {
    %c0_i32 = arith.constant 0 : i32
    %c0_i32_0 = arith.constant 0 : i32
    return %arg0, %c0_i32 : i32, i32
  }
  func.func @transform_2(%arg0: i32) -> (i32, i32) {
    %c0_i32 = arith.constant 0 : i32
    %c0_i32_0 = arith.constant 0 : i32
    %c0_i32_1 = arith.constant 0 : i32
    return %c0_i32, %c0_i32_0 : i32, i32
  }
  func.func @transform_3(%arg0: i32) -> (i32, i32) {
    %c0_i32 = arith.constant 0 : i32
    %c0_i32_0 = arith.constant 0 : i32
    %c0_i32_1 = arith.constant 0 : i32
    return %c0_i32, %c0_i32_0 : i32, i32
  }
  func.func @transform_4(%arg0: i32) -> (i32, i32) {
    %c0_i32 = arith.constant 0 : i32
    %c0_i32_0 = arith.constant 0 : i32
    %c0_i32_1 = arith.constant 0 : i32
    return %c0_i32, %c0_i32_0 : i32, i32
  }
  func.func @transform_5(%arg0: i32) -> (i32, i32) {
    %c0_i32 = arith.constant 0 : i32
    %c0_i32_0 = arith.constant 0 : i32
    %c0_i32_1 = arith.constant 0 : i32
    return %c0_i32, %c0_i32_0 : i32, i32
  }
  func.func @transform_6(%arg0: i32) -> (i32, i32) {
    %c0_i32 = arith.constant 0 : i32
    %c0_i32_0 = arith.constant 0 : i32
    %c0_i32_1 = arith.constant 0 : i32
    return %c0_i32, %c0_i32_0 : i32, i32
  }
  func.func @transform_7(%arg0: i32) -> (i32, i32) {
    %c0_i32 = arith.constant 0 : i32
    %c0_i32_0 = arith.constant 0 : i32
    %c0_i32_1 = arith.constant 0 : i32
    return %c0_i32, %c0_i32_0 : i32, i32
  }
  func.func @transform_8(%arg0: i32) -> (i32, i32) {
    %c0_i32 = arith.constant 0 : i32
    %c0_i32_0 = arith.constant 0 : i32
    return %arg0, %c0_i32 : i32, i32
  }
}

</mosaic_0001>

<bundles_post_ra>
// kernel: actor_forward.1
= control target key start
LH: loop header
LB: loop body
LE: loop exit
PB: predicated region body
PF: predicated region fallthrough
CT: control target
= control target key end

     0   :  { %14 = vsyncpa [#allocation4], 0  ;;  %s905_s0 = inlined_call_operand.<no memory space> [shape: f32[1,1], index: 0, kind: input, shape index: {}]   ;;  %s906_s1 = inlined_call_operand.vmem [shape: f32[2,16], index: 1, kind: input, shape index: {}]   ;;  %s907_s2 = inlined_call_operand.vmem [shape: bf16[16,256], index: 2, kind: input, shape index: {}]   ;;  %s908_s3 = inlined_call_operand.vmem [shape: f32[1,256], index: 3, kind: input, shape index: {}]   ;;  %s909_s4 = inlined_call_operand.hbm [shape: bf16[256,256], index: 4, kind: input, shape index: {}]   ;;  %s910_s5 = inlined_call_operand.vmem [shape: f32[1,256], index: 5, kind: input, shape index: {}]   ;;  %s911_s6 = inlined_call_operand.vmem [shape: bf16[256,8], index: 6, kind: input, shape index: {}]   ;;  %s912_s7 = inlined_call_operand.vmem [shape: f32[1,8], index: 7, kind: input, shape index: {}]   ;;  %s913_s8 = inlined_call_operand.hbm [shape: f32[2,8], index: 8, kind: output, shape index: {}]  }
   0x1   :  { %15 = vsyncpa [#allocation5], 0  ;;  %s762_s27 = smov [#allocation3]   ;;  %s714_s9 = scalar_lea.hbm %s909_s4, 4096 }
   0x2   :  { %s29_s28 = sshll.u32 %s762_s27, 4  ;;  %p715_p0 = scmp.ne.s32.totalorder %s909_s4, %s714_s9  ;;  %s30_s28 = int_to_ptr.vmem [resolvable:$true] %s29_s28 }
   0x3   :  { %p718_p1 = scmp.lt.u32.totalorder %s714_s9, %s909_s4 }
   0x5   :  { %p720_p2 = pnand %p718_p1, %p715_p0 }
   0x7   :  { %723 = shalt.err (!%p720_p2)
}
   0x8   :  { %s724_s14 = scalar_lea.vmem %s30_s28, 4096  ;;  %p729_p4 = scmp.lt.s32.totalorder %s30_s28, %s30_s28 }
   0x9   :  { %p725_p3 = scmp.ne.s32.totalorder %s30_s28, %s724_s14  ;;  %p730_p5 = scmp.lt.s32.totalorder %s724_s14, %s724_s14 }
   0xb   :  { %p731_p6 = por %p730_p5, %p729_p4 }
   0xd   :  { %p732_p7 = pnand %p731_p6, %p725_p3 }
   0xf   :  { %735 = shalt.err (!%p732_p7)
}
  0x10   :  { %s763_s15 = smov 128   ;;  %s764_s16 = smov 8  }
  0x11   :  { %35 = dma.hbm_to_vmem [thread:$0]  %s909_s4, 4096, %s30_s28, [#allocation4], %s763_s15, %s763_s15, %s764_s16  }
  0x12   :  { %758 = dma.done.wait [#allocation4], 4096  }
  0x13   :  { %759 = vsyncadd [#allocation4], 4294963200  ;;  %v765_v0 = vmov 0   ;;  %v645_v1 = vld [vmem:[%s907_s2 + $0x4] ss:$8 sps:$4 sm:$0xff]   ;;  %vm72_vm0 = vcmask 130048   ;;  %v52_v49 = vlaneseq }
  0x14   :  { %108 = vmatprep.mubr.bf16.mxu0 %v765_v0  ;;  %v647_v2 = vld [vmem:[%s907_s2] ss:$8 sps:$4 sm:$0xff]   ;;  %76 = vmatprep.subr.bf16.mxu0 %v645_v1  ;;  %v648_v5 = vld [vmem:[#allocation3 + $0x4] ss:$8 sps:$4 sm:$0xff]   ;;  %v651_v7 = vld [vmem:[#allocation3 + $0x14] ss:$8 sps:$4 sm:$0xff]  }
  0x15   :  { %v46_v3 = vld [vmem:[%s906_s1] sm:$0x3]  ;;  %77 = vmatpush1.bf16.msra.mxu0 %v647_v2  ;;  %325 = vmatprep.subr.bf16.mxu1 %v648_v5  ;;  %v653_v8 = vld [vmem:[#allocation3 + $0x10] ss:$8 sps:$4 sm:$0xff]   ;;  %v654_v9 = vld [vmem:[#allocation3 + $0x24] ss:$8 sps:$4 sm:$0xff]  }
  0x16   :  { %v47_v4 = vpack.c.bf16 %v46_v3, %v46_v3  ;;  %v650_v6 = vld [vmem:[#allocation3] ss:$8 sps:$4 sm:$0xff]   ;;  %v657_v11 = vld [vmem:[#allocation3 + $0x34] ss:$8 sps:$4 sm:$0xff]   ;;  %v659_v12 = vld [vmem:[#allocation3 + $0x30] ss:$8 sps:$4 sm:$0xff]  }
  0x17   :  { %326 = vmatpush1.bf16.msra.mxu1 %v650_v6  ;;  %v656_v10 = vld [vmem:[#allocation3 + $0x20] ss:$8 sps:$4 sm:$0xff]   ;;  %v660_v13 = vld [vmem:[#allocation3 + $0x44] ss:$8 sps:$4 sm:$0xff]   ;;  %v663_v15 = vld [vmem:[#allocation3 + $0x54] ss:$8 sps:$4 sm:$0xff]  }
  0x18   :  { %568 = vmatmul.mubr.msk.bf16.vlgmr.msra.gmra.mrb[0].mxu0 %vm72_vm0, %v47_v4  ;;  %327 = vmatprep.subr.bf16.mxu1 %v651_v7  ;;  %v662_v14 = vld [vmem:[#allocation3 + $0x40] ss:$8 sps:$4 sm:$0xff]   ;;  %v665_v16 = vld [vmem:[#allocation3 + $0x50] ss:$8 sps:$4 sm:$0xff]   ;;  %v666_v17 = vld [vmem:[#allocation3 + $0x64] ss:$8 sps:$4 sm:$0xff]  }
  0x19   :  { %v668_v18 = vld [vmem:[#allocation3 + $0x60] ss:$8 sps:$4 sm:$0xff]   ;;  %v669_v19 = vld [vmem:[#allocation3 + $0x74] ss:$8 sps:$4 sm:$0xff]   ;;  %v671_v20 = vld [vmem:[#allocation3 + $0x70] ss:$8 sps:$4 sm:$0xff]  }
  0x1a   :  { %v672_v21 = vld [vmem:[#allocation3 + $0x84] ss:$8 sps:$4 sm:$0xff]   ;;  %v674_v22 = vld [vmem:[#allocation3 + $0x80] ss:$8 sps:$4 sm:$0xff]   ;;  %v675_v23 = vld [vmem:[#allocation3 + $0x94] ss:$8 sps:$4 sm:$0xff]  }
  0x1b   :  { %328 = vmatpush1.bf16.msra.mxu1 %v653_v8  ;;  %v677_v24 = vld [vmem:[#allocation3 + $0x90] ss:$8 sps:$4 sm:$0xff]   ;;  %v678_v25 = vld [vmem:[#allocation3 + $0xa4] ss:$8 sps:$4 sm:$0xff]   ;;  %v680_v26 = vld [vmem:[#allocation3 + $0xa0] ss:$8 sps:$4 sm:$0xff]  }
  0x1c   :  { %329 = vmatprep.subr.bf16.mxu1 %v654_v9  ;;  %v681_v27 = vld [vmem:[#allocation3 + $0xb4] ss:$8 sps:$4 sm:$0xff]   ;;  %v683_v28 = vld [vmem:[#allocation3 + $0xb0] ss:$8 sps:$4 sm:$0xff]   ;;  %v684_v29 = vld [vmem:[#allocation3 + $0xc4] ss:$8 sps:$4 sm:$0xff]  }
  0x1d   :  { %v686_v30 = vld [vmem:[#allocation3 + $0xc0] ss:$8 sps:$4 sm:$0xff]   ;;  %v687_v31 = vld [vmem:[#allocation3 + $0xd4] ss:$8 sps:$4 sm:$0xff]   ;;  %v689_v32 = vld [vmem:[#allocation3 + $0xd0] ss:$8 sps:$4 sm:$0xff]  }
  0x1e   :  { %v690_v33 = vld [vmem:[#allocation3 + $0xe4] ss:$8 sps:$4 sm:$0xff]   ;;  %v692_v34 = vld [vmem:[#allocation3 + $0xe0] ss:$8 sps:$4 sm:$0xff]   ;;  %v693_v35 = vld [vmem:[#allocation3 + $0xf4] ss:$8 sps:$4 sm:$0xff]  }
  0x1f   :  { %330 = vmatpush1.bf16.msra.mxu1 %v656_v10  ;;  %v695_v36 = vld [vmem:[#allocation3 + $0xf0] ss:$8 sps:$4 sm:$0xff]   ;;  %v696_v37 = vld [vmem:[%s911_s6 + $0x40] sm:$0xff]   ;;  %v698_v39 = vld [vmem:[%s911_s6 + $0x48] sm:$0xff]   ;;  %v53_v50 = vshrl.u32 %v52_v49, 7  ;;  %s766_s12 = smov [#allocation6]  }
  0x20   :  { %331 = vmatprep.subr.bf16.mxu1 %v657_v11  ;;  %v697_v38 = vld [vmem:[%s911_s6] sm:$0xff]   ;;  %618 = vmatprep.subr.bf16.mxu0 %v696_v37  ;;  %v699_v40 = vld [vmem:[%s911_s6 + $0x8] sm:$0xff]   ;;  %v700_v41 = vld [vmem:[%s911_s6 + $0x50] sm:$0xff]   ;;  %s557_s13 = sshll.u32 %s766_s12, 4  ;;  %vm549_vm1 = vcmask 58368   ;;  %s558_s13 = int_to_ptr.vmem [resolvable:$true] %s557_s13 }
  0x21   :  { %619 = vmatpush3.bf16.msra.mxu0 %v697_v38  ;;  %v701_v42 = vld [vmem:[%s911_s6 + $0x10] sm:$0xff]   ;;  %v702_v43 = vld [vmem:[%s911_s6 + $0x58] sm:$0xff]   ;;  %v704_v45 = vld [vmem:[%s911_s6 + $0x60] sm:$0xff]   ;;  %v54_v51 = vsub.s32 0, %v53_v50  ;;  %v58_v53 = vsub.s32 1, %v53_v50  ;;  %s736_s14 = scalar_lea.vmem %s558_s13, 32  ;;  %p741_p9 = scmp.lt.s32.totalorder %s558_s13, %s558_s13 }
  0x22   :  { %620 = vmatprep.subr.bf16.mxu0 %v698_v39  ;;  %v703_v44 = vld [vmem:[%s911_s6 + $0x18] sm:$0xff]   ;;  %v705_v46 = vld [vmem:[%s911_s6 + $0x20] sm:$0xff]   ;;  %v706_v47 = vld [vmem:[%s911_s6 + $0x68] sm:$0xff]   ;;  %p737_p8 = scmp.ne.s32.totalorder %s558_s13, %s736_s14  ;;  %p742_p10 = scmp.lt.s32.totalorder %s736_s14, %s736_s14 }
  0x23   :  { %332 = vmatpush1.bf16.msra.mxu1 %v659_v12  ;;  %v707_v48 = vld [vmem:[%s911_s6 + $0x28] sm:$0xff]   ;;  %v50_v52 = vld [vmem:[%s908_s3] sm:$0x3]  ;;  %v708_v2 = vld [vmem:[%s911_s6 + $0x70] sm:$0xff]  }
  0x24   :  { %333 = vmatprep.subr.bf16.mxu1 %v660_v13  ;;  %v55_v54 = vrot.slane %v50_v52, %v54_v51  ;;  %v59_v55 = vrot.slane %v50_v52, %v58_v53  ;;  %v709_v3 = vld [vmem:[%s911_s6 + $0x30] sm:$0xff]   ;;  %v710_v4 = vld [vmem:[%s911_s6 + $0x78] sm:$0xff]   ;;  %v153_v6 = vld [vmem:[%s910_s5] sm:$0x3]  ;;  %p743_p11 = por %p742_p10, %p741_p9 }
  0x25   :  { %621 = vmatpush3.bf16.msra.mxu0 %v699_v40  ;;  %v711_v5 = vld [vmem:[%s911_s6 + $0x38] sm:$0xff]   ;;  %v158_v7 = vrot.slane %v153_v6, %v54_v51  ;;  %v162_v8 = vrot.slane %v153_v6, %v58_v53 }
  0x26   :  { %622 = vmatprep.subr.bf16.mxu0 %v700_v41  ;;  %p744_p12 = pnand %p743_p11, %p737_p8 }
  0x27   :  { %334 = vmatpush1.bf16.msra.mxu1 %v662_v14 }
  0x28   :  { %335 = vmatprep.subr.bf16.mxu1 %v663_v15 }
  0x29   :  { %623 = vmatpush3.bf16.msra.mxu0 %v701_v42 }
  0x2a   :  { %624 = vmatprep.subr.bf16.mxu0 %v702_v43 }
  0x2b   :  { %336 = vmatpush1.bf16.msra.mxu1 %v665_v16 }
  0x2c   :  { %337 = vmatprep.subr.bf16.mxu1 %v666_v17 }
  0x2d   :  { %625 = vmatpush3.bf16.msra.mxu0 %v703_v44 }
  0x2e   :  { %626 = vmatprep.subr.bf16.mxu0 %v704_v45 }
  0x2f   :  { %338 = vmatpush1.bf16.msra.mxu1 %v668_v18 }
  0x30   :  { %339 = vmatprep.subr.bf16.mxu1 %v669_v19 }
  0x31   :  { %627 = vmatpush3.bf16.msra.mxu0 %v705_v46 }
  0x32   :  { %628 = vmatprep.subr.bf16.mxu0 %v706_v47 }
  0x33   :  { %340 = vmatpush1.bf16.msra.mxu1 %v671_v20  ;;  %v601_v20 = vld [vmem:[%s912_s7] ss:$0 sm:$0xff] }
  0x34   :  { %341 = vmatprep.subr.bf16.mxu1 %v672_v21 }
  0x35   :  { %629 = vmatpush3.bf16.msra.mxu0 %v707_v48 }
  0x36   :  { %630 = vmatprep.subr.bf16.mxu0 %v708_v2 }
  0x37   :  { %342 = vmatpush1.bf16.msra.mxu1 %v674_v22 }
  0x38   :  { %343 = vmatprep.subr.bf16.mxu1 %v675_v23 }
  0x39   :  { %631 = vmatpush3.bf16.msra.mxu0 %v709_v3 }
  0x3a   :  { %632 = vmatprep.subr.bf16.mxu0 %v710_v4 }
  0x3b   :  { %344 = vmatpush1.bf16.msra.mxu1 %v677_v24 }
  0x3c   :  { %345 = vmatprep.subr.bf16.mxu1 %v678_v25 }
  0x3d   :  { %633 = vmatpush3.bf16.msra.mxu0 %v711_v5 }
  0x3f   :  { %346 = vmatpush1.bf16.msra.mxu1 %v680_v26  ;;  %v547_v26 = vstv %s905_s0 }
  0x40   :  { %347 = vmatprep.subr.bf16.mxu1 %v681_v27 }
  0x43   :  { %348 = vmatpush1.bf16.msra.mxu1 %v683_v28 }
  0x44   :  { %349 = vmatprep.subr.bf16.mxu1 %v684_v29 }
  0x47   :  { %350 = vmatpush1.bf16.msra.mxu1 %v686_v30 }
  0x48   :  { %351 = vmatprep.subr.bf16.mxu1 %v687_v31 }
  0x4b   :  { %352 = vmatpush1.bf16.msra.mxu1 %v689_v32 }
  0x4c   :  { %353 = vmatprep.subr.bf16.mxu1 %v690_v33 }
  0x4f   :  { %354 = vmatpush1.bf16.msra.mxu1 %v692_v34 }
  0x50   :  { %355 = vmatprep.subr.bf16.mxu1 %v693_v35 }
  0x53   :  { %356 = vmatpush1.bf16.msra.mxu1 %v695_v36 }
  0xeb   :  { %v110_v56 = vpop.f32.mrb[0].mxu0 }
  0xec   :  { %v111_v57 = vadd.f32 %v110_v56, %v55_v54  ;;  %v112_v58 = vpop.f32.mrb[1].mxu0 }
  0xed   :  { %v113_v59 = vadd.f32 %v112_v58, %v59_v55  ;;  %v114_v60 = vpop.f32.mrb[2].mxu0 }
  0xee   :  { %v117_v61 = vmax.f32 %v111_v57, 0.0  ;;  %v115_v62 = vpop.f32.mrb[3].mxu0 }
  0xef   :  { %v118_v63 = vmax.f32 %v113_v59, 0.0 }
  0xf0   :  { %v119_v1 = vpack.c.bf16 %v117_v61, %v117_v61 }
  0xf1   :  { %v120_v0 = vpack.c.bf16 %v118_v63, %v118_v63 }
  0xf3   :  { %357 = vmatprep.mubr.bf16.mxu1 %v120_v0 }
  0xf4   :  { %358 = vmatmul.mubr.bf16.vlgmr.msra.gmra.mrb[0].mxu1 %v119_v1 }
 0x1c7   :  { %v359_v9 = vpop.f32.mrb[0].mxu1 }
 0x1c8   :  { %v360_v10 = vadd.f32 %v359_v9, %v158_v7  ;;  %v361_v11 = vpop.f32.mrb[1].mxu1 }
 0x1c9   :  { %v362_v12 = vadd.f32 %v361_v11, %v162_v8  ;;  %v363_v13 = vpop.f32.mrb[2].mxu1 }
 0x1ca   :  { %v366_v14 = vmax.f32 %v360_v10, 0.0  ;;  %v364_v15 = vpop.f32.mrb[3].mxu1 }
 0x1cb   :  { %v367_v16 = vmax.f32 %v362_v12, 0.0 }
 0x1cc   :  { %v368_v18 = vpack.c.bf16 %v366_v14, %v366_v14 }
 0x1cd   :  { %v369_v17 = vpack.c.bf16 %v367_v16, %v367_v16 }
 0x1cf   :  { %538 = vmatprep.mubr.bf16.mxu0 %v369_v17 }
 0x1d0   :  { %539 = vmatmul.mubr.bf16.vlgmr.msra.gmra.mrb[4].mxu0 %v368_v18 }
 0x2a3   :  { %v634_v19 = vpop.f32.mrb[4].mxu0 }
 0x2a4   :  { %v635_v21 = vpop.f32.mrb[5].mxu0 }
 0x2a5   :  { %v636_v22 = vadd.f32 %v635_v21, %v634_v19  ;;  %v637_v23 = vpop.f32.mrb[6].mxu0 }
 0x2a6   :  { %v638_v24 = vpop.f32.mrb[7].mxu0 }
 0x2a7   :  { %v541_v25 = vadd.f32 %v636_v22, %v601_v20 }
 0x2a9   :  { %712 = vtanh.f32 %v541_v25 }
 0x2b3   :  { %v713_v27 = vpop.eup %712 }
 0x2b4   :  { %v548_v28 = vmul.f32 %v713_v27, %v547_v26 }
 0x2b6   :  { %550 = vst.msk [vmem:[#allocation6] sm:$0x3] %vm549_vm1, %v548_v28 }
 0x2b7   :  { %747 = shalt.err (!%p744_p12)
}
 0x2b8   :  { %s748_s16 = scalar_lea.hbm %s913_s8, 32 }
 0x2b9   :  { %p749_p13 = scmp.ne.s32.totalorder %s913_s8, %s748_s16  ;;  %p752_p0 = scmp.lt.u32.totalorder %s748_s16, %s913_s8 }
 0x2bb   :  { %p754_p1 = pnand %p752_p0, %p749_p13 }
 0x2bd   :  { %757 = shalt.err (!%p754_p1)
}
 0x2be   :  { %560 = dma.vmem_to_hbm [thread:$0]  %s558_s13, 32, %s913_s8, [#allocation5]  }
 0x2bf   :  { %760 = dma.done.wait [#allocation5], 32  }
 0x2c0   :  { %761 = vsyncadd [#allocation5], 4294967264 }
 0x2c1   :  { %564 = vsyncpa [#allocation4], 1 }
 0x2c2   :  { %565 = vsyncpa [#allocation5], 1 }

</bundles_post_ra>
